<compile_context>
chip_gen: v7x
topology: tpu7x:2x2x1
jax: 0.10.0
libtpu: 0.0.40
codegen_flags: <defaults>
</compile_context>

<pallas_src>
import functools

import jax
import jax.numpy as jnp
from jax.experimental import pallas as pl
from jax.experimental.pallas import tpu as pltpu

LANE = 128


def _round_up(x, m):
    return (x + m - 1) // m * m


# ----------------------------------------------------------------------------
# Fused Pallas kernel: (x @ W01 + b01) -> GELU -> (@ W23 + b23), one token tile.
# ----------------------------------------------------------------------------
def _fused_wxc_kernel(x_ref, w01_ref, b01_ref, w23_ref, b23_ref, o_ref):
    # x_ref  : (TM, d_in)   bf16
    # w01_ref: (d_in, hpad) bf16    b01_ref: (1, hpad) f32
    # w23_ref: (hpad, d_out) bf16   b23_ref: (1, d_out) f32
    # o_ref  : (TM, d_out)  bf16
    x = x_ref[...]

    h = jnp.dot(x, w01_ref[...], preferred_element_type=jnp.float32) + b01_ref[...]
    h = jax.nn.gelu(h, approximate=True)          # tanh -> EUP slot

    out = jnp.dot(h.astype(jnp.bfloat16), w23_ref[...],
                  preferred_element_type=jnp.float32) + b23_ref[...]

    o_ref[...] = out.astype(o_ref.dtype)


def fused_wxc_mlp(tokens, w01, b01, w23, b23):
    """Run the folded (embed·mlp1) -> GELU -> (mlp2·head) network in one pallas_call.

    tokens : (M, d_in)   f32 patch tokens
    w01    : (d_in, hpad) bf16, b01 (1, hpad) f32
    w23    : (hpad, d_out) bf16, b23 (1, d_out) f32
    returns: (M, d_out)  bf16
    """
    M, d_in = tokens.shape
    hpad = w01.shape[1]
    d_out = w23.shape[1]

    # Big token tiles: kernel is HBM-bound, large tiles amortize per-step cost.
    TM = min(2048, _round_up(M, 8))
    # v7x megacore: keep >= ~4 grid steps when there are enough tokens so the
    # 'parallel' axis can shard across 2 TensorCores.
    if M >= 2048:
        TM = min(TM, _round_up((M + 3) // 4, 8))
    M_pad = _round_up(M, TM)

    x = tokens.astype(jnp.bfloat16)
    if M_pad != M:
        x = jnp.pad(x, ((0, M_pad - M), (0, 0)))

    flops = 2 * M_pad * (d_in * hpad + hpad * d_out)
    bytes_accessed = (M_pad * d_in * 2        # bf16 tokens in
                      + w01.size * 2 + w23.size * 2      # bf16 weights
                      + b01.size * 4 + b23.size * 4      # f32 biases
                      + M_pad * d_out * 2)    # bf16 output

    out = pl.pallas_call(
        _fused_wxc_kernel,
        out_shape=jax.ShapeDtypeStruct((M_pad, d_out), jnp.bfloat16),
        grid=(M_pad // TM,),
        in_specs=[
            pl.BlockSpec((TM, d_in), lambda i: (i, 0)),     # token tile (pipelined)
            pl.BlockSpec((d_in, hpad), lambda i: (0, 0)),   # W01, VMEM-resident
            pl.BlockSpec((1, hpad), lambda i: (0, 0)),      # b01
            pl.BlockSpec((hpad, d_out), lambda i: (0, 0)),  # W23
            pl.BlockSpec((1, d_out), lambda i: (0, 0)),     # b23
        ],
        out_specs=pl.BlockSpec((TM, d_out), lambda i: (i, 0)),
        compiler_params=pltpu.CompilerParams(
            dimension_semantics=("parallel",),
        ),
        cost_estimate=pl.CostEstimate(
            flops=flops,
            transcendentals=M_pad * hpad,     # one tanh per GELU element
            bytes_accessed=bytes_accessed,
        ),
    )(x, w01, b01, w23, b23)

    return out[:M]


# ----------------------------------------------------------------------------
# Whole forward (patchify -> fused kernel -> unpatchify), jitted so XLA fuses
# the bf16 cast into the patchify transpose and lays out glue around the call.
# ----------------------------------------------------------------------------
@functools.partial(jax.jit, static_argnames=("patch", "c_out"))
def _wxc_forward(x, w01, b01, w23, b23, *, patch, c_out):
    B, C, H, W = x.shape
    p = patch
    hp, wp = H // p, W // p

    # NCHW -> (tokens, C*p*p)
    t = x.reshape(B, C, hp, p, wp, p)
    t = jnp.transpose(t, (0, 2, 4, 1, 3, 5)).reshape(B * hp * wp, C * p * p)

    out_tokens = fused_wxc_mlp(t, w01, b01, w23, b23)   # bf16, (tokens, d_out)

    # (tokens, C_out*p*p) -> NCHW, then back to f32 (module contract).
    y = out_tokens.reshape(B, hp, wp, c_out, p, p)
    y = jnp.transpose(y, (0, 3, 1, 4, 2, 5)).reshape(B, c_out, hp * p, wp * p)
    return y.astype(jnp.float32)


# ----------------------------------------------------------------------------
# Synthetic WxC inner module (backbone + head); params built in-script.
# ----------------------------------------------------------------------------
class SyntheticWxCModule:
    """Deterministic stand-in for the module wrapped by WxCModuleWrapper."""

    def __init__(self, c_in=4, c_out=4, hidden=32, patch=4, key=None):
        self.c_in, self.c_out, self.hidden, self.patch = c_in, c_out, hidden, patch
        key = jax.random.PRNGKey(42) if key is None else key
        ks = jax.random.split(key, 4)

        d_in = c_in * patch * patch
        d_out = c_out * patch * patch
        self.d_in, self.d_out = d_in, d_out

        s = 0.02
        # Logical (unpadded) f32 parameters — kept so the wrapper's
        # freeze_encoder/freeze_decoder have a .backbone / .head to touch and
        # so the pure-JAX reference can run the original un-fused math.
        self.backbone = {
            "embed_w": s * jax.random.normal(ks[0], (d_in, hidden), jnp.float32),
            "embed_b": jnp.zeros((hidden,), jnp.float32),
            "mlp1_w": s * jax.random.normal(ks[1], (hidden, hidden), jnp.float32),
            "mlp1_b": jnp.zeros((hidden,), jnp.float32),
            "mlp2_w": s * jax.random.normal(ks[2], (hidden, hidden), jnp.float32),
            "mlp2_b": jnp.zeros((hidden,), jnp.float32),
        }
        self.head = {
            "proj_w": s * jax.random.normal(ks[3], (hidden, d_out), jnp.float32),
            "proj_b": jnp.zeros((d_out,), jnp.float32),
        }

        # ---- Offline layer fold (exact, done in f32, then cast to bf16) ----
        # No nonlinearity between embed->mlp1 or mlp2->head, so:
        #   h = gelu(x @ (We @ W1) + (be @ W1 + b1))
        #   o = h @ (W2 @ Wp) + (b2 @ Wp + bp)
        bb, hd = self.backbone, self.head
        w01 = bb["embed_w"] @ bb["mlp1_w"]                       # (d_in, hidden)
        b01 = bb["embed_b"] @ bb["mlp1_w"] + bb["mlp1_b"]        # (hidden,)
        w23 = bb["mlp2_w"] @ hd["proj_w"]                        # (hidden, d_out)
        b23 = bb["mlp2_b"] @ hd["proj_w"] + hd["proj_b"]         # (d_out,)

        # Hidden dim padded to a lane-dense 128 so the intermediate is
        # lane-aligned; padding is exact (padded W01 cols, b01 entries and
        # W23 rows are zero, GELU(0)=0 so padded lanes contribute nothing).
        hpad = _round_up(hidden, LANE)
        self.hpad = hpad
        self.w01 = jnp.pad(w01, ((0, 0), (0, hpad - hidden))).astype(jnp.bfloat16)
        self.b01 = jnp.pad(b01, (0, hpad - hidden)).reshape(1, hpad).astype(jnp.float32)
        self.w23 = jnp.pad(w23, ((0, hpad - hidden), (0, 0))).astype(jnp.bfloat16)
        self.b23 = b23.reshape(1, d_out).astype(jnp.float32)

    def forward(self, x):
        return _wxc_forward(x, self.w01, self.b01, self.w23, self.b23,
                            patch=self.patch, c_out=self.c_out)

    # Pure-JAX f32 reference of the ORIGINAL un-fused math (correctness check).
    def forward_reference(self, x):
        B, C, H, W = x.shape
        p = self.patch
        hp, wp = H // p, W // p
        t = x.reshape(B, C, hp, p, wp, p)
        t = jnp.transpose(t, (0, 2, 4, 1, 3, 5)).reshape(B * hp * wp, C * p * p)
        bb, hd = self.backbone, self.head
        h = t @ bb["embed_w"] + bb["embed_b"]
        h = jax.nn.gelu(h @ bb["mlp1_w"] + bb["mlp1_b"], approximate=True)
        h = h @ bb["mlp2_w"] + bb["mlp2_b"]
        o = h @ hd["proj_w"] + hd["proj_b"]
        y = o.reshape(B, hp, wp, self.c_out, p, p)
        return jnp.transpose(y, (0, 3, 1, 4, 2, 5)).reshape(B, self.c_out, hp * p, wp * p)


class ModelOutput:
    """Minimal mirror of terratorch's ModelOutput(output=...)."""

    def __init__(self, output):
        self.output = output


class WxCModuleWrapper:
    """JAX/Pallas port of terratorch WxCModuleWrapper: thin forwarding wrapper."""

    def __init__(self, module):
        self.module = module

    def freeze_encoder(self):
        # TODO(synk): parameter freezing (requires_grad) is a training-time
        # concern; no-op in this inference kernel.
        pass

    def freeze_decoder(self):
        pass

    def load_state_dict(self, state_dict, strict=True, assign=False):
        # TODO(synk): state-dict loading forwards to the inner module in
        # terratorch; not modeled for this in-script synthetic module.
        pass

    def forward(self, x):
        mo = self.module.forward(x)
        return ModelOutput(mo)

    def __call__(self, x):
        return self.forward(x)


# ----------------------------------------------------------------------------
if __name__ == "__main__":
    key = jax.random.PRNGKey(0)
    # small NCHW input consistent with a WxC image-like tensor
    x = jax.random.normal(key, (2, 4, 16, 16), dtype=jnp.float32)

    inner = SyntheticWxCModule(c_in=4, c_out=4, hidden=32, patch=4)
    model = WxCModuleWrapper(inner)

    out = model(x)
    jax.block_until_ready(out.output)

    assert out.output.shape == (2, 4, 16, 16)
    assert out.output.dtype == jnp.float32

    # Correctness vs. pure-JAX f32 un-fused reference
    # (bf16 MXU inputs + bf16 output -> loose relative tolerance).
    ref = inner.forward_reference(x)
    err = float(jnp.max(jnp.abs(out.output - ref)))
    scale = float(jnp.max(jnp.abs(ref)))
    assert err <= 5e-2 * scale + 1e-6, f"mismatch: err={err}, scale={scale}"

    print("KERNEL_OK")
</pallas_src>

<mosaic_0001>
module attributes {stable_mosaic.version = 11 : i64} {
  func.func @_fused_wxc_kernel(%arg0: i32, %arg1: memref<32x64xbf16, #tpu.memory_space<vmem>>, %arg2: memref<64x128xbf16, #tpu.memory_space<vmem>>, %arg3: memref<1x128xf32, #tpu.memory_space<vmem>>, %arg4: memref<128x64xbf16, #tpu.memory_space<vmem>>, %arg5: memref<1x64xf32, #tpu.memory_space<vmem>>, %arg6: memref<32x64xbf16, #tpu.memory_space<vmem>>) attributes {dimension_semantics = [#tpu.dimension_semantics<parallel>], iteration_bounds = array<i64: 1>, scalar_prefetch = 0 : i64, scratch_operands = 0 : i64, tpu.core_type = #tpu.core_type<tc>, window_params = [{transform_indices = @transform_0, window_bounds = array<i64: 32, 64>}, {pipeline_mode = #tpu.pipeline_mode<synchronous>, transform_indices = @transform_1, window_bounds = array<i64: 64, 128>}, {pipeline_mode = #tpu.pipeline_mode<synchronous>, transform_indices = @transform_2, window_bounds = array<i64: 1, 128>}, {pipeline_mode = #tpu.pipeline_mode<synchronous>, transform_indices = @transform_3, window_bounds = array<i64: 128, 64>}, {pipeline_mode = #tpu.pipeline_mode<synchronous>, transform_indices = @transform_4, window_bounds = array<i64: 1, 64>}, {transform_indices = @transform_5, window_bounds = array<i64: 32, 64>}]} {
    %c0 = arith.constant 0 : index
    %c0_0 = arith.constant 0 : index
    %0 = vector.load %arg1[%c0, %c0_0] : memref<32x64xbf16, #tpu.memory_space<vmem>>, vector<32x64xbf16>
    %c0_1 = arith.constant 0 : index
    %c0_2 = arith.constant 0 : index
    %1 = vector.load %arg2[%c0_1, %c0_2] : memref<64x128xbf16, #tpu.memory_space<vmem>>, vector<64x128xbf16>
    %cst = arith.constant dense<0.000000e+00> : vector<32x128xf32>
    %2 = tpu.matmul %0, %1, %cst {dimension_numbers = #tpu.dot_dimension_numbers<[1], [0], [0], [1], [0, 0, 1, 1], [], []>} : vector<32x64xbf16>, vector<64x128xbf16>, vector<32x128xf32> -> vector<32x128xf32>
    %c0_3 = arith.constant 0 : index
    %c0_4 = arith.constant 0 : index
    %3 = vector.load %arg3[%c0_3, %c0_4] : memref<1x128xf32, #tpu.memory_space<vmem>>, vector<1x128xf32>
    %4 = vector.broadcast %3 : vector<1x128xf32> to vector<32x128xf32>
    %5 = arith.addf %2, %4 : vector<32x128xf32>
    %6 = arith.mulf %5, %5 : vector<32x128xf32>
    %7 = arith.mulf %5, %6 : vector<32x128xf32>
    %cst_5 = arith.constant 4.471500e-02 : f32
    %8 = vector.broadcast %cst_5 : f32 to vector<32x128xf32>
    %9 = arith.mulf %8, %7 : vector<32x128xf32>
    %10 = arith.addf %5, %9 : vector<32x128xf32>
    %cst_6 = arith.constant 0.797884583 : f32
    %11 = vector.broadcast %cst_6 : f32 to vector<32x128xf32>
    %12 = arith.mulf %11, %10 : vector<32x128xf32>
    %13 = math.tanh %12 : vector<32x128xf32>
    %cst_7 = arith.constant 1.000000e+00 : f32
    %14 = vector.broadcast %cst_7 : f32 to vector<32x128xf32>
    %15 = arith.addf %14, %13 : vector<32x128xf32>
    %cst_8 = arith.constant 5.000000e-01 : f32
    %16 = vector.broadcast %cst_8 : f32 to vector<32x128xf32>
    %17 = arith.mulf %16, %15 : vector<32x128xf32>
    %18 = arith.mulf %5, %17 : vector<32x128xf32>
    %19 = arith.truncf %18 : vector<32x128xf32> to vector<32x128xbf16>
    %c0_9 = arith.constant 0 : index
    %c0_10 = arith.constant 0 : index
    %20 = vector.load %arg4[%c0_9, %c0_10] : memref<128x64xbf16, #tpu.memory_space<vmem>>, vector<128x64xbf16>
    %cst_11 = arith.constant dense<0.000000e+00> : vector<32x64xf32>
    %21 = tpu.matmul %19, %20, %cst_11 {dimension_numbers = #tpu.dot_dimension_numbers<[1], [0], [0], [1], [0, 0, 1, 1], [], []>} : vector<32x128xbf16>, vector<128x64xbf16>, vector<32x64xf32> -> vector<32x64xf32>
    %c0_12 = arith.constant 0 : index
    %c0_13 = arith.constant 0 : index
    %22 = vector.load %arg5[%c0_12, %c0_13] : memref<1x64xf32, #tpu.memory_space<vmem>>, vector<1x64xf32>
    %23 = vector.broadcast %22 : vector<1x64xf32> to vector<32x64xf32>
    %24 = arith.addf %21, %23 : vector<32x64xf32>
    %25 = arith.truncf %24 : vector<32x64xf32> to vector<32x64xbf16>
    %c0_14 = arith.constant 0 : index
    %c0_15 = arith.constant 0 : index
    %26 = vector.load %arg6[%c0_14, %c0_15] : memref<32x64xbf16, #tpu.memory_space<vmem>>, vector<32x64xbf16>
    tpu.vector_store %arg6[%c0_14, %c0_15], %25 {strides = array<i32>} : memref<32x64xbf16, #tpu.memory_space<vmem>>, vector<32x64xbf16>,
    return
  }
  func.func @transform_0(%arg0: i32) -> (i32, i32) {
    %c0_i32 = arith.constant 0 : i32
    %c0_i32_0 = arith.constant 0 : i32
    return %arg0, %c0_i32 : i32, i32
  }
  func.func @transform_1(%arg0: i32) -> (i32, i32) {
    %c0_i32 = arith.constant 0 : i32
    %c0_i32_0 = arith.constant 0 : i32
    %c0_i32_1 = arith.constant 0 : i32
    return %c0_i32, %c0_i32_0 : i32, i32
  }
  func.func @transform_2(%arg0: i32) -> (i32, i32) {
    %c0_i32 = arith.constant 0 : i32
    %c0_i32_0 = arith.constant 0 : i32
    %c0_i32_1 = arith.constant 0 : i32
    return %c0_i32, %c0_i32_0 : i32, i32
  }
  func.func @transform_3(%arg0: i32) -> (i32, i32) {
    %c0_i32 = arith.constant 0 : i32
    %c0_i32_0 = arith.constant 0 : i32
    %c0_i32_1 = arith.constant 0 : i32
    return %c0_i32, %c0_i32_0 : i32, i32
  }
  func.func @transform_4(%arg0: i32) -> (i32, i32) {
    %c0_i32 = arith.constant 0 : i32
    %c0_i32_0 = arith.constant 0 : i32
    %c0_i32_1 = arith.constant 0 : i32
    return %c0_i32, %c0_i32_0 : i32, i32
  }
  func.func @transform_5(%arg0: i32) -> (i32, i32) {
    %c0_i32 = arith.constant 0 : i32
    %c0_i32_0 = arith.constant 0 : i32
    return %arg0, %c0_i32 : i32, i32
  }
}

</mosaic_0001>

<bundles_post_ra>
// kernel: _wxc_forward.1
= control target key start
LH: loop header
LB: loop body
LE: loop exit
PB: predicated region body
PF: predicated region fallthrough
CT: control target
= control target key end

     0   :  { %vm74_vm0 = vcmask 523264   ;;  %vm304_vm1 = vcmask 519168   ;;  %s499_s1 = inlined_call_operand.vmem [shape: bf16[64,128], index: 1, kind: input, shape index: {}]   ;;  %s500_s0 = inlined_call_operand.vmem [shape: bf16[32,64], index: 0, kind: input, shape index: {}]   ;;  %s501_s3 = inlined_call_operand.vmem [shape: bf16[128,64], index: 3, kind: input, shape index: {}]   ;;  %s502_s2 = inlined_call_operand.vmem [shape: f32[1,128], index: 2, kind: input, shape index: {}]   ;;  %s503_s4 = inlined_call_operand.vmem [shape: f32[1,64], index: 4, kind: input, shape index: {}]   ;;  %s504_s5 = inlined_call_operand.vmem [shape: bf16[32,64], index: 5, kind: output, shape index: {}]  }
   0x1   :  { %v387_v0 = vld [vmem:[%s499_s1] sm:$0xff]   ;;  %v388_v1 = vld [vmem:[%s499_s1 + $0x8] sm:$0xff]   ;;  %v389_v2 = vld [vmem:[%s499_s1 + $0x10] sm:$0xff]  }
   0x2   :  { %355 = vmatprep.subr.bf16.mxu0 %v387_v0  ;;  %v391_v3 = vld [vmem:[%s500_s0] sm:$0xff]   ;;  %v390_v4 = vld [vmem:[%s499_s1 + $0x18] sm:$0xff]   ;;  %v392_v5 = vld [vmem:[%s500_s0 + $0x8] sm:$0xff]  }
   0x3   :  { %356 = vmatpush3.bf16.msra.mxu0 %v387_v0  ;;  %363 = vmatprep.mubr.msk.bf16.mxu0 %vm74_vm0, %v391_v3  ;;  %v393_v6 = vld [vmem:[%s501_s3] sm:$0xff]   ;;  %v394_v7 = vld [vmem:[%s501_s3 + $0x8] sm:$0xff]   ;;  %v395_v8 = vld [vmem:[%s501_s3 + $0x10] sm:$0xff]  }
   0x4   :  { %357 = vmatprep.subr.bf16.mxu0 %v388_v1  ;;  %367 = vmatprep.subr.bf16.mxu1 %v393_v6  ;;  %v396_v9 = vld [vmem:[%s501_s3 + $0x18] sm:$0xff]   ;;  %v397_v10 = vld [vmem:[%s501_s3 + $0x20] sm:$0xff]   ;;  %v398_v11 = vld [vmem:[%s501_s3 + $0x28] sm:$0xff]  }
   0x5   :  { %368 = vmatpush3.bf16.msra.mxu1 %v393_v6  ;;  %v399_v12 = vld [vmem:[%s501_s3 + $0x30] sm:$0xff]   ;;  %v400_v13 = vld [vmem:[%s501_s3 + $0x38] sm:$0xff]   ;;  %v313_v14 = vld [vmem:[%s502_s2] ss:$0 sm:$0xff] }
   0x6   :  { %369 = vmatprep.subr.bf16.mxu1 %v394_v7  ;;  %v322_v61 = vld [vmem:[%s503_s4] ss:$0 sm:$0xff] }
   0x7   :  { %358 = vmatpush3.bf16.msra.mxu0 %v388_v1 }
   0x8   :  { %359 = vmatprep.subr.bf16.mxu0 %v389_v2 }
   0x9   :  { %370 = vmatpush3.bf16.msra.mxu1 %v394_v7 }
   0xa   :  { %371 = vmatprep.subr.bf16.mxu1 %v395_v8 }
   0xb   :  { %360 = vmatpush3.bf16.msra.mxu0 %v389_v2 }
   0xc   :  { %361 = vmatprep.subr.bf16.mxu0 %v390_v4 }
   0xd   :  { %372 = vmatpush3.bf16.msra.mxu1 %v395_v8 }
   0xe   :  { %373 = vmatprep.subr.bf16.mxu1 %v396_v9 }
   0xf   :  { %362 = vmatpush3.bf16.msra.mxu0 %v390_v4 }
  0x11   :  { %374 = vmatpush3.bf16.msra.mxu1 %v396_v9 }
  0x12   :  { %364 = vmatmul.mubr.msk.bf16.vlgmr.msra.gmra.mrb[0].mxu0 %vm74_vm0, %v392_v5  ;;  %375 = vmatprep.subr.bf16.mxu1 %v397_v10 }
  0x15   :  { %376 = vmatpush3.bf16.msra.mxu1 %v397_v10 }
  0x16   :  { %377 = vmatprep.subr.bf16.mxu1 %v398_v11 }
  0x19   :  { %378 = vmatpush3.bf16.msra.mxu1 %v398_v11 }
  0x1a   :  { %379 = vmatprep.subr.bf16.mxu1 %v399_v12 }
  0x1d   :  { %380 = vmatpush3.bf16.msra.mxu1 %v399_v12 }
  0x1e   :  { %381 = vmatprep.subr.bf16.mxu1 %v400_v13 }
  0x21   :  { %382 = vmatpush3.bf16.msra.mxu1 %v400_v13 }
  0xe5   :  { %v365_v15 = vpop.f32.mrb[0].mxu0 }
  0xe6   :  { %v124_v16 = vadd.f32 %v365_v15, %v313_v14  ;;  %v115_v17 = vpop.f32.mrb[1].mxu0 }
  0xe7   :  { %v116_v18 = vadd.f32 %v313_v14, %v115_v17  ;;  %v366_v19 = vpop.f32.mrb[2].mxu0 }
  0xe8   :  { %v132_v20 = vmul.f32 %v124_v16, %v124_v16  ;;  %v127_v21 = vadd.f32 %v366_v19, %v313_v14  ;;  %v118_v22 = vpop.f32.mrb[3].mxu0 }
  0xe9   :  { %v130_v23 = vmul.f32 %v116_v18, %v116_v18  ;;  %v119_v24 = vadd.f32 %v313_v14, %v118_v22 }
  0xea   :  { %v136_v25 = vmul.f32 %v132_v20, %v124_v16  ;;  %v133_v26 = vmul.f32 %v127_v21, %v127_v21 }
  0xeb   :  { %v134_v27 = vmul.f32 %v130_v23, %v116_v18  ;;  %v131_v28 = vmul.f32 %v119_v24, %v119_v24 }
  0xec   :  { %v140_v29 = vmul.f32 0.044715, %v136_v25  ;;  %v137_v30 = vmul.f32 %v133_v26, %v127_v21 }
  0xed   :  { %v138_v31 = vmul.f32 0.044715, %v134_v27  ;;  %v135_v32 = vmul.f32 %v131_v28, %v119_v24 }
  0xee   :  { %v144_v33 = vadd.f32 %v140_v29, %v124_v16  ;;  %v141_v34 = vmul.f32 0.044715, %v137_v30 }
  0xef   :  { %v139_v35 = vmul.f32 0.044715, %v135_v32  ;;  %v142_v36 = vadd.f32 %v138_v31, %v116_v18 }
  0xf0   :  { %v148_v37 = vmul.f32 0.7978846, %v144_v33  ;;  %v145_v38 = vadd.f32 %v141_v34, %v127_v21 }
  0xf1   :  { %v143_v39 = vadd.f32 %v139_v35, %v119_v24  ;;  %v146_v40 = vmul.f32 0.7978846, %v142_v36 }
  0xf2   :  { %401 = vtanh.f32 %v148_v37  ;;  %v149_v41 = vmul.f32 0.7978846, %v145_v38 }
  0xf3   :  { %v147_v42 = vmul.f32 0.7978846, %v143_v39  ;;  %403 = vtanh.f32 %v146_v40 }
  0xf4   :  { %405 = vtanh.f32 %v149_v41 }
  0xf5   :  { %407 = vtanh.f32 %v147_v42 }
  0xfc   :  { %v402_v43 = vpop.eup %401 }
  0xfd   :  { %v404_v44 = vpop.eup %403  ;;  %v156_v45 = vadd.f32 1.0, %v402_v43 }
  0xfe   :  { %v406_v46 = vpop.eup %405  ;;  %v154_v47 = vadd.f32 1.0, %v404_v44 }
  0xff   :  { %v408_v48 = vpop.eup %407  ;;  %v157_v49 = vadd.f32 1.0, %v406_v46  ;;  %v160_v50 = vmul.f32 0.5, %v156_v45 }
 0x100   :  { %v155_v51 = vadd.f32 1.0, %v408_v48  ;;  %v158_v52 = vmul.f32 0.5, %v154_v47 }
 0x101   :  { %v161_v53 = vmul.f32 0.5, %v157_v49  ;;  %v164_v55 = vmul.f32 %v160_v50, %v124_v16 }
 0x102   :  { %v159_v54 = vmul.f32 0.5, %v155_v51  ;;  %v162_v57 = vmul.f32 %v158_v52, %v116_v18 }
 0x103   :  { %v165_v56 = vmul.f32 %v161_v53, %v127_v21 }
 0x104   :  { %v163_v58 = vmul.f32 %v159_v54, %v119_v24 }
 0x105   :  { %v167_v59 = vpack.c.bf16 %v165_v56, %v164_v55 }
 0x106   :  { %v166_v60 = vpack.c.bf16 %v163_v58, %v162_v57 }
 0x108   :  { %383 = vmatprep.mubr.bf16.mxu1 %v166_v60 }
 0x109   :  { %384 = vmatmul.mubr.bf16.vlgmr.msra.gmra.mrb[0].mxu1 %v167_v59 }
 0x1dc   :  { %v385_v62 = vpop.f32.mrb[0].mxu1 }
 0x1dd   :  { %v282_v63 = vadd.f32 %v385_v62, %v322_v61  ;;  %v273_v0 = vpop.f32.mrb[1].mxu1 }
 0x1de   :  { %v274_v1 = vadd.f32 %v322_v61, %v273_v0  ;;  %v386_v2 = vpop.f32.mrb[2].mxu1 }
 0x1df   :  { %v337_v3 = vpack.c.bf16 %v282_v63, %v282_v63  ;;  %v285_v4 = vadd.f32 %v386_v2, %v322_v61  ;;  %v276_v5 = vpop.f32.mrb[3].mxu1 }
 0x1e0   :  { %v335_v6 = vpack.c.bf16 %v274_v1, %v274_v1  ;;  %v277_v7 = vadd.f32 %v322_v61, %v276_v5 }
 0x1e1   :  { %307 = vst.msk [vmem:[%s504_s5 + $0x8] sm:$0xf] %vm304_vm1, %v337_v3  ;;  %v338_v8 = vpack.c.bf16 %v285_v4, %v285_v4 }
 0x1e2   :  { %305 = vst.msk [vmem:[%s504_s5] sm:$0xf] %vm304_vm1, %v335_v6  ;;  %v336_v9 = vpack.c.bf16 %v277_v7, %v277_v7 }
 0x1e3   :  { %308 = vst.msk [vmem:[%s504_s5 + $0xc] sm:$0xf] %vm304_vm1, %v338_v8 }
 0x1e4   :  { %306 = vst.msk [vmem:[%s504_s5 + $0x4] sm:$0xf] %vm304_vm1, %v336_v9 }

</bundles_post_ra>
